<compile_context>
chip_gen: v7x
topology: tpu7x:2x2x1
jax: 0.10.0
libtpu: 0.0.40
codegen_flags: <defaults>
</compile_context>

<pallas_src>
import functools
import math

import jax
import jax.numpy as jnp
from jax.experimental import pallas as pl
from jax.experimental.pallas import tpu as pltpu


# -----------------------------------------------------------------------------
# Pallas kernel: router MLP + softmax + top-k gating, per token tile
# -----------------------------------------------------------------------------
def _router_kernel(x_ref, w1_ref, b1_ref, w2_ref, b2_ref, w3_ref, b3_ref,
                   out_ref, *, inv_temperature, top_k, num_experts):
    # --- 3-layer router MLP: bf16 MXU operands, f32 accumulation -------------
    x = x_ref[...].astype(jnp.bfloat16)                               # (TN, H)

    h1 = jnp.dot(x, w1_ref[...], preferred_element_type=jnp.float32) + b1_ref[...]
    h1 = jnp.maximum(h1, 0.0)                                         # ReLU, f32

    h2 = jnp.dot(h1.astype(jnp.bfloat16), w2_ref[...],
                 preferred_element_type=jnp.float32) + b2_ref[...]
    h2 = jnp.maximum(h2, 0.0)                                         # ReLU, f32

    logits = jnp.dot(h2.astype(jnp.bfloat16), w3_ref[...],
                     preferred_element_type=jnp.float32) + b3_ref[...]
    # padded expert lanes carry a -1e9 bias -> still hugely negative after the
    # positive 1/temperature scale -> exp underflows to exactly 0 below.
    logits = logits * inv_temperature                                 # (TN, Epad)

    m = jnp.max(logits, axis=-1, keepdims=True)
    e = jnp.exp(logits - m)                                           # unnormalized probs

    e_pad = e.shape[-1]
    col = jax.lax.broadcasted_iota(jnp.int32, e.shape, 1)

    if top_k >= num_experts:
        # no gating: plain softmax (exact divide -> rows sum to 1 in f32)
        w = e / jnp.sum(e, axis=-1, keepdims=True)
    elif top_k == 1:
        # softmax is monotone -> select directly on the unnormalized probs.
        # The renormalized top-1 weight is exactly 1 at the winning expert.
        cmax = jnp.max(e, axis=-1, keepdims=True)
        first_idx = jnp.min(jnp.where(e == cmax, col, e_pad),
                            axis=-1, keepdims=True)                   # lowest-index max
        w = (col == first_idx).astype(jnp.float32)
    else:
        # iterative top-k on the unnormalized probs (statically unrolled;
        # top_k is small).  Probs are >= 0, so -1.0 is a safe "taken" sentinel.
        selected = jnp.zeros(e.shape, dtype=jnp.bool_)
        for _ in range(top_k):
            cand = jnp.where(selected, -1.0, e)
            cmax = jnp.max(cand, axis=-1, keepdims=True)
            first_idx = jnp.min(jnp.where(cand == cmax, col, e_pad),
                                axis=-1, keepdims=True)
            selected = jnp.logical_or(selected, col == first_idx)
        e_sel = jnp.where(selected, e, 0.0)
        # exact divide: rows sum to 1 to f32 precision (matches torch renorm;
        # the torch +1e-8 term is a <=1e-7 relative perturbation, ignored)
        w = e_sel / jnp.sum(e_sel, axis=-1, keepdims=True)

    # store only the real experts: unpadded (TN, E) tile, no padded-f32 HBM
    # traffic and no wrapper-side slice pass
    out_ref[...] = w[:, :num_experts]


# -----------------------------------------------------------------------------
# Generation-aware tile / VMEM sizing helpers
# -----------------------------------------------------------------------------
def _vmem_capacity_bytes():
    try:
        return int(pltpu.get_tpu_info().vmem_capacity_bytes)
    except Exception:
        return 128 << 20            # v5e / v6e default (v7x reports 64 MiB/TC)


def _choose_token_tile(n_tokens, hidden, in_bytes, vmem_cap):
    """Pick a token-tile size: big (HBM roofline) but VMEM- and core-friendly."""
    # x-tile budget (double-buffered x stream); tile 512-1024 reaches ~85% of
    # HBM roofline vs ~63% at 256, so spend VMEM here.  Smaller budget on v7x
    # (64 MiB/TC physical VMEM).
    budget = (16 << 20) if vmem_cap <= (64 << 20) else (24 << 20)
    tn = budget // max(1, 2 * hidden * in_bytes)
    tn = int(max(8, min(tn, 1024)))
    tn = (tn // 8) * 8

    n_rounded = ((n_tokens + 7) // 8) * 8
    tn = min(tn, n_rounded)

    # core-aware step count: prefer an even number of grid steps (v7x shards
    # the "parallel" axis across 2 TensorCores); only force a split when there
    # is enough work (extra step costs ~0.35 us on single-core parts).
    if n_rounded >= 16:
        steps = pl.cdiv(n_rounded, tn)
        if steps == 1:
            tn = max(8, ((pl.cdiv(n_rounded, 2) + 7) // 8) * 8)
        elif steps % 2 == 1:
            tn = max(8, ((pl.cdiv(n_rounded, steps + 1) + 7) // 8) * 8)
    return max(8, (tn // 8) * 8)


def _vmem_limit_bytes(tn, hidden, rh, rh2, e_pad, e, in_bytes, vmem_cap,
                      weight_bufs):
    x_tile = 2 * tn * hidden * in_bytes                        # double-buffered x
    out_tile = 2 * tn * max(e, 8) * 4                          # double-buffered f32 out
    weights = weight_bufs * ((hidden * rh + rh * rh2 + rh2 * e_pad) * 2  # bf16 W
                             + (rh + rh2 + e_pad) * 4)                   # f32 b
    inter = 2 * tn * (rh + rh2 + 2 * e_pad) * 4                # intermediates headroom
    total = x_tile + out_tile + weights + inter + (8 << 20)
    # clamp to physical VMEM minus headroom (56 MiB on v7x, 120 MiB v5e/v6e)
    cap = max(vmem_cap - (8 << 20), 32 << 20)
    return int(min(max(total, 32 << 20), cap))


# -----------------------------------------------------------------------------
# One-time parameter preparation (hoisted out of the forward pass)
# -----------------------------------------------------------------------------
def prepare_token_router_params(params):
    """Cast weights to bf16 and pad the expert dim once, outside forward()."""
    w1, b1, w2, b2, w3, b3 = (params[k] for k in ("w1", "b1", "w2", "b2", "w3", "b3"))
    E = int(w3.shape[1])
    E_pad = pl.cdiv(E, 128) * 128
    if E_pad != E:
        # padded expert columns: zero weights + -1e9 bias -> exactly-0 prob,
        # never selected by top-k (see invariant note at top of file)
        w3 = jnp.pad(w3, ((0, 0), (0, E_pad - E)))
        b3 = jnp.pad(b3, ((0, 0), (0, E_pad - E)), constant_values=-1e9)
    return {
        "_prepared": True,
        "num_experts": E,
        "w1": w1.astype(jnp.bfloat16), "b1": b1.astype(jnp.float32),
        "w2": w2.astype(jnp.bfloat16), "b2": b2.astype(jnp.float32),
        "w3": w3.astype(jnp.bfloat16), "b3": b3.astype(jnp.float32),
    }


# -----------------------------------------------------------------------------
# pallas_call wrapper
# -----------------------------------------------------------------------------
def _pallas_routing(flat, prep, TN, grid, vmem_limit, temperature, top_k,
                    use_buffered_weights):
    N, H = flat.shape
    E = prep["num_experts"]

    if use_buffered_weights:
        def wspec(shape):
            # grid-invariant weight/bias: a single VMEM buffer is enough
            return pl.BlockSpec(shape, lambda i: (0, 0),
                                pipeline_mode=pl.Buffered(1))
    else:
        def wspec(shape):
            return pl.BlockSpec(shape, lambda i: (0, 0))

    kernel = functools.partial(
        _router_kernel,
        inv_temperature=1.0 / float(temperature),
        top_k=int(top_k),
        num_experts=int(E))

    return pl.pallas_call(
        kernel,
        out_shape=jax.ShapeDtypeStruct((N, E), jnp.float32),
        grid_spec=pltpu.PrefetchScalarGridSpec(
            num_scalar_prefetch=0,
            grid=grid,
            in_specs=[
                pl.BlockSpec((TN, H), lambda i: (i, 0)),       # token tile (native dtype)
                wspec(prep["w1"].shape), wspec(prep["b1"].shape),
                wspec(prep["w2"].shape), wspec(prep["b2"].shape),
                wspec(prep["w3"].shape), wspec(prep["b3"].shape),
            ],
            out_specs=pl.BlockSpec((TN, E), lambda i: (i, 0)),  # unpadded experts
        ),
        compiler_params=pltpu.CompilerParams(
            dimension_semantics=("parallel",),
            vmem_limit_bytes=vmem_limit),
    )(flat, prep["w1"], prep["b1"], prep["w2"], prep["b2"], prep["w3"], prep["b3"])


def token_router_forward(hidden_states, params, *, temperature=1.0, top_k=1,
                         load_balancing_weight=0.01):
    """Pallas implementation of TokenRouter.forward (eval path).

    Returns (routing_weights [B,S,E], routing_info dict).
    """
    prep = params if (isinstance(params, dict) and params.get("_prepared")) \
        else prepare_token_router_params(params)
    B, S, H = hidden_states.shape
    E = prep["num_experts"]
    rh, rh2, e_pad = prep["w1"].shape[1], prep["w2"].shape[1], prep["w3"].shape[1]
    N = B * S

    flat = hidden_states.reshape(N, H)            # native dtype, no upcast / pad
    in_bytes = jnp.dtype(flat.dtype).itemsize
    vmem_cap = _vmem_capacity_bytes()

    TN = _choose_token_tile(N, H, in_bytes, vmem_cap)
    grid = (pl.cdiv(N, TN),)

    try:
        vmem_limit = _vmem_limit_bytes(TN, H, rh, rh2, e_pad, E, in_bytes,
                                       vmem_cap, weight_bufs=1)
        routing = _pallas_routing(flat, prep, TN, grid, vmem_limit,
                                  temperature, top_k, use_buffered_weights=True)
        routing = jax.block_until_ready(routing)
    except Exception:
        # TODO(synk): some JAX builds reject pl.Buffered(1) on top-level
        # pallas_call specs; fall back to default double-buffered weights.
        vmem_limit = _vmem_limit_bytes(TN, H, rh, rh2, e_pad, E, in_bytes,
                                       vmem_cap, weight_bufs=2)
        routing = _pallas_routing(flat, prep, TN, grid, vmem_limit,
                                  temperature, top_k, use_buffered_weights=False)

    routing_weights = routing.reshape(B, S, E)

    # --- routing_info (small reductions; plain JAX glue, matches
    # _compute_routing_info).  The kernel output is already unpadded (N,E), so
    # there is no extra slice pass over HBM before these reductions.
    total_tokens = B * S
    expert_usage = routing_weights.sum(axis=(0, 1))
    target_usage = total_tokens / E
    load_balance_loss = jnp.sum((expert_usage - target_usage) ** 2) / E
    load_balance_loss = load_balance_loss * load_balancing_weight
    routing_probs = routing_weights.mean(axis=(0, 1))
    routing_entropy = -jnp.sum(routing_probs * jnp.log(routing_probs + 1e-8))
    expert_utilization = expert_usage / total_tokens
    routing_confidence = routing_weights.max(axis=-1).mean()
    routing_info = {
        "load_balance_loss": load_balance_loss,
        "routing_entropy": routing_entropy,
        "expert_utilization": expert_utilization,
        "routing_confidence": routing_confidence,
        "expert_usage": expert_usage,
        "total_tokens": total_tokens,
    }
    return routing_weights, routing_info


# -----------------------------------------------------------------------------
# Deterministic parameter init (mirrors TokenRouter._init_router_weights)
# -----------------------------------------------------------------------------
def init_token_router_params(key, hidden_size, num_experts, router_hidden_size=256):
    rh = router_hidden_size
    rh2 = rh // 2
    k1, k2, k3 = jax.random.split(key, 3)

    def xavier_uniform(k, fan_in, fan_out):
        limit = math.sqrt(6.0 / (fan_in + fan_out))
        return jax.random.uniform(k, (fan_in, fan_out), jnp.float32, -limit, limit)

    return {
        "w1": xavier_uniform(k1, hidden_size, rh),
        "b1": jnp.zeros((1, rh), jnp.float32),
        "w2": xavier_uniform(k2, rh, rh2),
        "b2": jnp.zeros((1, rh2), jnp.float32),
        # final layer: normal(0, 0.01), bias 0
        "w3": 0.01 * jax.random.normal(k3, (rh2, num_experts), jnp.float32),
        "b3": jnp.zeros((1, num_experts), jnp.float32),
    }


if __name__ == "__main__":
    # small shapes consistent with the module's forward
    B, S, H = 2, 8, 32
    NUM_EXPERTS = 4
    ROUTER_HIDDEN = 256
    TEMPERATURE = 1.0

    key = jax.random.PRNGKey(0)
    kx, kp = jax.random.split(key)
    hidden_states = jax.random.normal(kx, (B, S, H), jnp.float32)
    params = init_token_router_params(kp, H, NUM_EXPERTS, ROUTER_HIDDEN)
    prepared = prepare_token_router_params(params)   # one-time prep (hoisted)

    # top_k = 1 (specialized one-hot path)
    routing_weights, routing_info = token_router_forward(
        hidden_states, prepared, temperature=TEMPERATURE, top_k=1)
    jax.block_until_ready(routing_weights)
    jax.block_until_ready(routing_info["load_balance_loss"])

    assert routing_weights.shape == (B, S, NUM_EXPERTS)
    assert bool(jnp.all(jnp.isfinite(routing_weights)))
    assert bool(jnp.allclose(routing_weights.sum(-1), 1.0, atol=1e-5))
    assert bool(jnp.all((routing_weights > 0).sum(-1) == 1))

    # top_k = 2 (general iterative top-k path)
    rw2, _ = token_router_forward(hidden_states, prepared,
                                  temperature=TEMPERATURE, top_k=2)
    jax.block_until_ready(rw2)
    assert bool(jnp.all(jnp.isfinite(rw2)))
    assert bool(jnp.allclose(rw2.sum(-1), 1.0, atol=1e-5))
    assert bool(jnp.all((rw2 > 0).sum(-1) == 2))

    print("KERNEL_OK")
</pallas_src>

<mosaic_0001>
module attributes {stable_mosaic.version = 11 : i64} {
  func.func @_router_kernel(%arg0: i32, %arg1: memref<8x32xf32, #tpu.memory_space<vmem>>, %arg2: memref<32x256xbf16, #tpu.memory_space<vmem>>, %arg3: memref<1x256xf32, #tpu.memory_space<vmem>>, %arg4: memref<256x128xbf16, #tpu.memory_space<vmem>>, %arg5: memref<1x128xf32, #tpu.memory_space<vmem>>, %arg6: memref<128x128xbf16, #tpu.memory_space<vmem>>, %arg7: memref<1x128xf32, #tpu.memory_space<vmem>>, %arg8: memref<8x4xf32, #tpu.memory_space<vmem>>) attributes {dimension_semantics = [#tpu.dimension_semantics<parallel>], iteration_bounds = array<i64: 2>, scalar_prefetch = 0 : i64, scratch_operands = 0 : i64, tpu.core_type = #tpu.core_type<tc>, window_params = [{transform_indices = @transform_0, window_bounds = array<i64: 8, 32>}, {pipeline_mode = #tpu.pipeline_mode<synchronous>, transform_indices = @transform_1, window_bounds = array<i64: 32, 256>}, {pipeline_mode = #tpu.pipeline_mode<synchronous>, transform_indices = @transform_2, window_bounds = array<i64: 1, 256>}, {pipeline_mode = #tpu.pipeline_mode<synchronous>, transform_indices = @transform_3, window_bounds = array<i64: 256, 128>}, {pipeline_mode = #tpu.pipeline_mode<synchronous>, transform_indices = @transform_4, window_bounds = array<i64: 1, 128>}, {pipeline_mode = #tpu.pipeline_mode<synchronous>, transform_indices = @transform_5, window_bounds = array<i64: 128, 128>}, {pipeline_mode = #tpu.pipeline_mode<synchronous>, transform_indices = @transform_6, window_bounds = array<i64: 1, 128>}, {transform_indices = @transform_7, window_bounds = array<i64: 8, 4>}]} {
    %c0 = arith.constant 0 : index
    %c0_0 = arith.constant 0 : index
    %0 = vector.load %arg1[%c0, %c0_0] : memref<8x32xf32, #tpu.memory_space<vmem>>, vector<8x32xf32>
    %1 = arith.truncf %0 : vector<8x32xf32> to vector<8x32xbf16>
    %c0_1 = arith.constant 0 : index
    %c0_2 = arith.constant 0 : index
    %2 = vector.load %arg2[%c0_1, %c0_2] : memref<32x256xbf16, #tpu.memory_space<vmem>>, vector<32x256xbf16>
    %cst = arith.constant dense<0.000000e+00> : vector<8x256xf32>
    %3 = tpu.matmul %1, %2, %cst {dimension_numbers = #tpu.dot_dimension_numbers<[1], [0], [0], [1], [0, 0, 1, 1], [], []>} : vector<8x32xbf16>, vector<32x256xbf16>, vector<8x256xf32> -> vector<8x256xf32>
    %c0_3 = arith.constant 0 : index
    %c0_4 = arith.constant 0 : index
    %4 = vector.load %arg3[%c0_3, %c0_4] : memref<1x256xf32, #tpu.memory_space<vmem>>, vector<1x256xf32>
    %5 = vector.broadcast %4 : vector<1x256xf32> to vector<8x256xf32>
    %6 = arith.addf %3, %5 : vector<8x256xf32>
    %cst_5 = arith.constant 0.000000e+00 : f32
    %7 = vector.broadcast %cst_5 : f32 to vector<8x256xf32>
    %8 = arith.maximumf %6, %7 : vector<8x256xf32>
    %9 = arith.truncf %8 : vector<8x256xf32> to vector<8x256xbf16>
    %c0_6 = arith.constant 0 : index
    %c0_7 = arith.constant 0 : index
    %10 = vector.load %arg4[%c0_6, %c0_7] : memref<256x128xbf16, #tpu.memory_space<vmem>>, vector<256x128xbf16>
    %cst_8 = arith.constant dense<0.000000e+00> : vector<8x128xf32>
    %11 = tpu.matmul %9, %10, %cst_8 {dimension_numbers = #tpu.dot_dimension_numbers<[1], [0], [0], [1], [0, 0, 1, 1], [], []>} : vector<8x256xbf16>, vector<256x128xbf16>, vector<8x128xf32> -> vector<8x128xf32>
    %c0_9 = arith.constant 0 : index
    %c0_10 = arith.constant 0 : index
    %12 = vector.load %arg5[%c0_9, %c0_10] : memref<1x128xf32, #tpu.memory_space<vmem>>, vector<1x128xf32>
    %13 = vector.broadcast %12 : vector<1x128xf32> to vector<8x128xf32>
    %14 = arith.addf %11, %13 : vector<8x128xf32>
    %cst_11 = arith.constant 0.000000e+00 : f32
    %15 = vector.broadcast %cst_11 : f32 to vector<8x128xf32>
    %16 = arith.maximumf %14, %15 : vector<8x128xf32>
    %17 = arith.truncf %16 : vector<8x128xf32> to vector<8x128xbf16>
    %c0_12 = arith.constant 0 : index
    %c0_13 = arith.constant 0 : index
    %18 = vector.load %arg6[%c0_12, %c0_13] : memref<128x128xbf16, #tpu.memory_space<vmem>>, vector<128x128xbf16>
    %cst_14 = arith.constant dense<0.000000e+00> : vector<8x128xf32>
    %19 = tpu.matmul %17, %18, %cst_14 {dimension_numbers = #tpu.dot_dimension_numbers<[1], [0], [0], [1], [0, 0, 1, 1], [], []>} : vector<8x128xbf16>, vector<128x128xbf16>, vector<8x128xf32> -> vector<8x128xf32>
    %c0_15 = arith.constant 0 : index
    %c0_16 = arith.constant 0 : index
    %20 = vector.load %arg7[%c0_15, %c0_16] : memref<1x128xf32, #tpu.memory_space<vmem>>, vector<1x128xf32>
    %21 = vector.broadcast %20 : vector<1x128xf32> to vector<8x128xf32>
    %22 = arith.addf %19, %21 : vector<8x128xf32>
    %cst_17 = arith.constant 1.000000e+00 : f32
    %23 = vector.broadcast %cst_17 : f32 to vector<8x128xf32>
    %24 = arith.mulf %22, %23 : vector<8x128xf32>
    %cst_18 = arith.constant dense<0xFF800000> : vector<8xf32>
    %25 = vector.multi_reduction <maximumf>, %24, %cst_18 [1] : vector<8x128xf32> to vector<8xf32>
    %26 = vector.shape_cast %25 : vector<8xf32> to vector<8x1xf32>
    %27 = vector.broadcast %26 : vector<8x1xf32> to vector<8x128xf32>
    %28 = arith.subf %24, %27 : vector<8x128xf32>
    %29 = math.exp %28 : vector<8x128xf32>
    %30 = tpu.iota {dimensions = array<i32: 1>} : vector<8x128xi32>
    %cst_19 = arith.constant dense<0xFF800000> : vector<8xf32>
    %31 = vector.multi_reduction <maximumf>, %29, %cst_19 [1] : vector<8x128xf32> to vector<8xf32>
    %32 = vector.shape_cast %31 : vector<8xf32> to vector<8x1xf32>
    %33 = vector.broadcast %32 : vector<8x1xf32> to vector<8x128xf32>
    %34 = arith.cmpf oeq, %29, %33 : vector<8x128xf32>
    %c128_i32 = arith.constant 128 : i32
    %35 = vector.broadcast %c128_i32 : i32 to vector<8x128xi32>
    %36 = arith.select %34, %30, %35 : vector<8x128xi1>, vector<8x128xi32>
    %cst_20 = arith.constant dense<2147483647> : vector<8xi32>
    %37 = vector.multi_reduction <minsi>, %36, %cst_20 [1] : vector<8x128xi32> to vector<8xi32>
    %38 = vector.shape_cast %37 : vector<8xi32> to vector<8x1xi32>
    %39 = vector.broadcast %38 : vector<8x1xi32> to vector<8x128xi32>
    %40 = arith.cmpi eq, %30, %39 : vector<8x128xi32>
    %41 = arith.extui %40 : vector<8x128xi1> to vector<8x128xi32>
    %42 = arith.sitofp %41 : vector<8x128xi32> to vector<8x128xf32>
    %43 = vector.extract_strided_slice %42 {offsets = [0, 0], sizes = [8, 4], strides = [1, 1]} : vector<8x128xf32> to vector<8x4xf32>
    %c0_21 = arith.constant 0 : index
    %c0_22 = arith.constant 0 : index
    %44 = vector.load %arg8[%c0_21, %c0_22] : memref<8x4xf32, #tpu.memory_space<vmem>>, vector<8x4xf32>
    tpu.vector_store %arg8[%c0_21, %c0_22], %43 {strides = array<i32>} : memref<8x4xf32, #tpu.memory_space<vmem>>, vector<8x4xf32>,
    return
  }
  func.func @transform_0(%arg0: i32) -> (i32, i32) {
    %c0_i32 = arith.constant 0 : i32
    %c0_i32_0 = arith.constant 0 : i32
    return %arg0, %c0_i32 : i32, i32
  }
  func.func @transform_1(%arg0: i32) -> (i32, i32) {
    %c0_i32 = arith.constant 0 : i32
    %c0_i32_0 = arith.constant 0 : i32
    %c0_i32_1 = arith.constant 0 : i32
    return %c0_i32, %c0_i32_0 : i32, i32
  }
  func.func @transform_2(%arg0: i32) -> (i32, i32) {
    %c0_i32 = arith.constant 0 : i32
    %c0_i32_0 = arith.constant 0 : i32
    %c0_i32_1 = arith.constant 0 : i32
    return %c0_i32, %c0_i32_0 : i32, i32
  }
  func.func @transform_3(%arg0: i32) -> (i32, i32) {
    %c0_i32 = arith.constant 0 : i32
    %c0_i32_0 = arith.constant 0 : i32
    %c0_i32_1 = arith.constant 0 : i32
    return %c0_i32, %c0_i32_0 : i32, i32
  }
  func.func @transform_4(%arg0: i32) -> (i32, i32) {
    %c0_i32 = arith.constant 0 : i32
    %c0_i32_0 = arith.constant 0 : i32
    %c0_i32_1 = arith.constant 0 : i32
    return %c0_i32, %c0_i32_0 : i32, i32
  }
  func.func @transform_5(%arg0: i32) -> (i32, i32) {
    %c0_i32 = arith.constant 0 : i32
    %c0_i32_0 = arith.constant 0 : i32
    %c0_i32_1 = arith.constant 0 : i32
    return %c0_i32, %c0_i32_0 : i32, i32
  }
  func.func @transform_6(%arg0: i32) -> (i32, i32) {
    %c0_i32 = arith.constant 0 : i32
    %c0_i32_0 = arith.constant 0 : i32
    %c0_i32_1 = arith.constant 0 : i32
    return %c0_i32, %c0_i32_0 : i32, i32
  }
  func.func @transform_7(%arg0: i32) -> (i32, i32) {
    %c0_i32 = arith.constant 0 : i32
    %c0_i32_0 = arith.constant 0 : i32
    return %arg0, %c0_i32 : i32, i32
  }
}

module attributes {stable_mosaic.version = 11 : i64} {
  func.func @_router_kernel(%arg0: i32, %arg1: memref<8x32xf32, #tpu.memory_space<vmem>>, %arg2: memref<32x256xbf16, #tpu.memory_space<vmem>>, %arg3: memref<1x256xf32, #tpu.memory_space<vmem>>, %arg4: memref<256x128xbf16, #tpu.memory_space<vmem>>, %arg5: memref<1x128xf32, #tpu.memory_space<vmem>>, %arg6: memref<128x128xbf16, #tpu.memory_space<vmem>>, %arg7: memref<1x128xf32, #tpu.memory_space<vmem>>, %arg8: memref<8x4xf32, #tpu.memory_space<vmem>>) attributes {dimension_semantics = [#tpu.dimension_semantics<parallel>], iteration_bounds = array<i64: 2>, scalar_prefetch = 0 : i64, scratch_operands = 0 : i64, tpu.core_type = #tpu.core_type<tc>, window_params = [{transform_indices = @transform_0, window_bounds = array<i64: 8, 32>}, {pipeline_mode = #tpu.pipeline_mode<synchronous>, transform_indices = @transform_1, window_bounds = array<i64: 32, 256>}, {pipeline_mode = #tpu.pipeline_mode<synchronous>, transform_indices = @transform_2, window_bounds = array<i64: 1, 256>}, {pipeline_mode = #tpu.pipeline_mode<synchronous>, transform_indices = @transform_3, window_bounds = array<i64: 256, 128>}, {pipeline_mode = #tpu.pipeline_mode<synchronous>, transform_indices = @transform_4, window_bounds = array<i64: 1, 128>}, {pipeline_mode = #tpu.pipeline_mode<synchronous>, transform_indices = @transform_5, window_bounds = array<i64: 128, 128>}, {pipeline_mode = #tpu.pipeline_mode<synchronous>, transform_indices = @transform_6, window_bounds = array<i64: 1, 128>}, {transform_indices = @transform_7, window_bounds = array<i64: 8, 4>}]} {
    %c0 = arith.constant 0 : index
    %c0_0 = arith.constant 0 : index
    %0 = vector.load %arg1[%c0, %c0_0] : memref<8x32xf32, #tpu.memory_space<vmem>>, vector<8x32xf32>
    %1 = arith.truncf %0 : vector<8x32xf32> to vector<8x32xbf16>
    %c0_1 = arith.constant 0 : index
    %c0_2 = arith.constant 0 : index
    %2 = vector.load %arg2[%c0_1, %c0_2] : memref<32x256xbf16, #tpu.memory_space<vmem>>, vector<32x256xbf16>
    %cst = arith.constant dense<0.000000e+00> : vector<8x256xf32>
    %3 = tpu.matmul %1, %2, %cst {dimension_numbers = #tpu.dot_dimension_numbers<[1], [0], [0], [1], [0, 0, 1, 1], [], []>} : vector<8x32xbf16>, vector<32x256xbf16>, vector<8x256xf32> -> vector<8x256xf32>
    %c0_3 = arith.constant 0 : index
    %c0_4 = arith.constant 0 : index
    %4 = vector.load %arg3[%c0_3, %c0_4] : memref<1x256xf32, #tpu.memory_space<vmem>>, vector<1x256xf32>
    %5 = vector.broadcast %4 : vector<1x256xf32> to vector<8x256xf32>
    %6 = arith.addf %3, %5 : vector<8x256xf32>
    %cst_5 = arith.constant 0.000000e+00 : f32
    %7 = vector.broadcast %cst_5 : f32 to vector<8x256xf32>
    %8 = arith.maximumf %6, %7 : vector<8x256xf32>
    %9 = arith.truncf %8 : vector<8x256xf32> to vector<8x256xbf16>
    %c0_6 = arith.constant 0 : index
    %c0_7 = arith.constant 0 : index
    %10 = vector.load %arg4[%c0_6, %c0_7] : memref<256x128xbf16, #tpu.memory_space<vmem>>, vector<256x128xbf16>
    %cst_8 = arith.constant dense<0.000000e+00> : vector<8x128xf32>
    %11 = tpu.matmul %9, %10, %cst_8 {dimension_numbers = #tpu.dot_dimension_numbers<[1], [0], [0], [1], [0, 0, 1, 1], [], []>} : vector<8x256xbf16>, vector<256x128xbf16>, vector<8x128xf32> -> vector<8x128xf32>
    %c0_9 = arith.constant 0 : index
    %c0_10 = arith.constant 0 : index
    %12 = vector.load %arg5[%c0_9, %c0_10] : memref<1x128xf32, #tpu.memory_space<vmem>>, vector<1x128xf32>
    %13 = vector.broadcast %12 : vector<1x128xf32> to vector<8x128xf32>
    %14 = arith.addf %11, %13 : vector<8x128xf32>
    %cst_11 = arith.constant 0.000000e+00 : f32
    %15 = vector.broadcast %cst_11 : f32 to vector<8x128xf32>
    %16 = arith.maximumf %14, %15 : vector<8x128xf32>
    %17 = arith.truncf %16 : vector<8x128xf32> to vector<8x128xbf16>
    %c0_12 = arith.constant 0 : index
    %c0_13 = arith.constant 0 : index
    %18 = vector.load %arg6[%c0_12, %c0_13] : memref<128x128xbf16, #tpu.memory_space<vmem>>, vector<128x128xbf16>
    %cst_14 = arith.constant dense<0.000000e+00> : vector<8x128xf32>
    %19 = tpu.matmul %17, %18, %cst_14 {dimension_numbers = #tpu.dot_dimension_numbers<[1], [0], [0], [1], [0, 0, 1, 1], [], []>} : vector<8x128xbf16>, vector<128x128xbf16>, vector<8x128xf32> -> vector<8x128xf32>
    %c0_15 = arith.constant 0 : index
    %c0_16 = arith.constant 0 : index
    %20 = vector.load %arg7[%c0_15, %c0_16] : memref<1x128xf32, #tpu.memory_space<vmem>>, vector<1x128xf32>
    %21 = vector.broadcast %20 : vector<1x128xf32> to vector<8x128xf32>
    %22 = arith.addf %19, %21 : vector<8x128xf32>
    %cst_17 = arith.constant 1.000000e+00 : f32
    %23 = vector.broadcast %cst_17 : f32 to vector<8x128xf32>
    %24 = arith.mulf %22, %23 : vector<8x128xf32>
    %cst_18 = arith.constant dense<0xFF800000> : vector<8xf32>
    %25 = vector.multi_reduction <maximumf>, %24, %cst_18 [1] : vector<8x128xf32> to vector<8xf32>
    %26 = vector.shape_cast %25 : vector<8xf32> to vector<8x1xf32>
    %27 = vector.broadcast %26 : vector<8x1xf32> to vector<8x128xf32>
    %28 = arith.subf %24, %27 : vector<8x128xf32>
    %29 = math.exp %28 : vector<8x128xf32>
    %30 = tpu.iota {dimensions = array<i32: 1>} : vector<8x128xi32>
    %cst_19 = arith.constant dense<0xFF800000> : vector<8xf32>
    %31 = vector.multi_reduction <maximumf>, %29, %cst_19 [1] : vector<8x128xf32> to vector<8xf32>
    %32 = vector.shape_cast %31 : vector<8xf32> to vector<8x1xf32>
    %33 = vector.broadcast %32 : vector<8x1xf32> to vector<8x128xf32>
    %34 = arith.cmpf oeq, %29, %33 : vector<8x128xf32>
    %c128_i32 = arith.constant 128 : i32
    %35 = vector.broadcast %c128_i32 : i32 to vector<8x128xi32>
    %36 = arith.select %34, %30, %35 : vector<8x128xi1>, vector<8x128xi32>
    %cst_20 = arith.constant dense<2147483647> : vector<8xi32>
    %37 = vector.multi_reduction <minsi>, %36, %cst_20 [1] : vector<8x128xi32> to vector<8xi32>
    %38 = vector.shape_cast %37 : vector<8xi32> to vector<8x1xi32>
    %39 = vector.broadcast %38 : vector<8x1xi32> to vector<8x128xi32>
    %40 = arith.cmpi eq, %30, %39 : vector<8x128xi32>
    %41 = arith.extui %40 : vector<8x128xi1> to vector<8x128xi32>
    %42 = arith.sitofp %41 : vector<8x128xi32> to vector<8x128xf32>
    %43 = vector.extract_strided_slice %42 {offsets = [0, 0], sizes = [8, 4], strides = [1, 1]} : vector<8x128xf32> to vector<8x4xf32>
    %c0_21 = arith.constant 0 : index
    %c0_22 = arith.constant 0 : index
    %44 = vector.load %arg8[%c0_21, %c0_22] : memref<8x4xf32, #tpu.memory_space<vmem>>, vector<8x4xf32>
    tpu.vector_store %arg8[%c0_21, %c0_22], %43 {strides = array<i32>} : memref<8x4xf32, #tpu.memory_space<vmem>>, vector<8x4xf32>,
    return
  }
  func.func @transform_0(%arg0: i32) -> (i32, i32) {
    %c0_i32 = arith.constant 0 : i32
    %c0_i32_0 = arith.constant 0 : i32
    return %arg0, %c0_i32 : i32, i32
  }
  func.func @transform_1(%arg0: i32) -> (i32, i32) {
    %c0_i32 = arith.constant 0 : i32
    %c0_i32_0 = arith.constant 0 : i32
    %c0_i32_1 = arith.constant 0 : i32
    return %c0_i32, %c0_i32_0 : i32, i32
  }
  func.func @transform_2(%arg0: i32) -> (i32, i32) {
    %c0_i32 = arith.constant 0 : i32
    %c0_i32_0 = arith.constant 0 : i32
    %c0_i32_1 = arith.constant 0 : i32
    return %c0_i32, %c0_i32_0 : i32, i32
  }
  func.func @transform_3(%arg0: i32) -> (i32, i32) {
    %c0_i32 = arith.constant 0 : i32
    %c0_i32_0 = arith.constant 0 : i32
    %c0_i32_1 = arith.constant 0 : i32
    return %c0_i32, %c0_i32_0 : i32, i32
  }
  func.func @transform_4(%arg0: i32) -> (i32, i32) {
    %c0_i32 = arith.constant 0 : i32
    %c0_i32_0 = arith.constant 0 : i32
    %c0_i32_1 = arith.constant 0 : i32
    return %c0_i32, %c0_i32_0 : i32, i32
  }
  func.func @transform_5(%arg0: i32) -> (i32, i32) {
    %c0_i32 = arith.constant 0 : i32
    %c0_i32_0 = arith.constant 0 : i32
    %c0_i32_1 = arith.constant 0 : i32
    return %c0_i32, %c0_i32_0 : i32, i32
  }
  func.func @transform_6(%arg0: i32) -> (i32, i32) {
    %c0_i32 = arith.constant 0 : i32
    %c0_i32_0 = arith.constant 0 : i32
    %c0_i32_1 = arith.constant 0 : i32
    return %c0_i32, %c0_i32_0 : i32, i32
  }
  func.func @transform_7(%arg0: i32) -> (i32, i32) {
    %c0_i32 = arith.constant 0 : i32
    %c0_i32_0 = arith.constant 0 : i32
    return %arg0, %c0_i32 : i32, i32
  }
}

</mosaic_0001>

<bundles_post_ra>
// kernel: tpu_custom_call.1
= control target key start
LH: loop header
LB: loop body
LE: loop exit
PB: predicated region body
PF: predicated region fallthrough
CT: control target
= control target key end

     0   :  { %12 = vsyncpa [#allocation3], 0  ;;  %s1468_s0 = inlined_call_operand.hbm [shape: f32[16,32], index: 0, kind: input, shape index: {}]   ;;  %s1469_s1 = inlined_call_operand.hbm [shape: bf16[32,256], index: 1, kind: input, shape index: {}]   ;;  %s1470_s2 = inlined_call_operand.vmem [shape: f32[1,256], index: 2, kind: input, shape index: {}]   ;;  %s1471_s3 = inlined_call_operand.hbm [shape: bf16[256,128], index: 3, kind: input, shape index: {}]   ;;  %s1472_s4 = inlined_call_operand.vmem [shape: f32[1,128], index: 4, kind: input, shape index: {}]   ;;  %s1473_s5 = inlined_call_operand.hbm [shape: bf16[128,128], index: 5, kind: input, shape index: {}]   ;;  %s1474_s6 = inlined_call_operand.vmem [shape: f32[1,128], index: 6, kind: input, shape index: {}]   ;;  %s1475_s7 = inlined_call_operand.vmem [shape: f32[16,4], index: 7, kind: output, shape index: {}]  }
   0x1   :  { %14 = vsyncpa [#allocation3 + $0x1], 0 }
   0x2   :  { %15 = vsyncpa [#allocation5], 0 }
   0x3   :  { %16 = vsyncpa [#allocation8], 0  ;;  %s1255_s24 = smov 0   ;;  %s1257_s25 = smov 0  }
   0x4   :  { %s1259_s26 = smov 0   ;;  %s1261_s27 = smov 0  }
   0x5 LB: > { %s1274_s28 = sadd.s32 4294967295, %s1202_s27   ;;  %p42_p0 = scmp.ne.s32.totalorder %s1194_s25, %s1190_s24  ;;  %s1202_s27 = sphi %s1261_s27, %s1493_s27   ;;  %s1198_s26 = sphi %s1259_s26, %s1492_s26   ;;  %s1194_s25 = sphi %s1257_s25, %s1491_s25   ;;  %s1190_s24 = sphi %s1255_s24, %s1490_s24  }
   0x6   : > { %p1476_p1 = scmp.eq.s32.totalorder %s1274_s28, 0  ;;  %p839_p2 = scmp.ge.s32.totalorder %s1202_s27, 1 }
   0x7   : > { %p205_p3 = scmp.lt.s32.totalorder %s1202_s27, 3  ;;  %s1204_s8 = smov [#allocation4]  }
   0x8   : > { %p1282_p4 = por %p1476_p1, %p42_p0  ;;  %s217_s9 = sshll.u32 %s1204_s8, 4  ;;  %s218_s9 = int_to_ptr.vmem [resolvable:$true] %s217_s9 }
   0x9   : > { %p1286_p5 = pnand %p839_p2, %p205_p3  ;;  %s1205_s11 = smov [#allocation6]  }
   0xa   : > { %s1479_s29 = scalar_select %p1282_p4, 1, 0 }
   0xb   : > { %s1480_s30 = scalar_select %p1286_p5, 1, 0 }
   0xc   : > { %p951_p6 = pneg %p1286_p5  ;;  %s233_s12 = sshll.u32 %s1205_s11, 4  ;;  %s1298_s12 = int_to_ptr.vmem [resolvable:$true] %s233_s12 }
   0xd   : > { %s1046_s15 = scalar_lea.hbm %s1469_s1, 512 }
   0xe   : > { %p1294_p7 = pnand %p951_p6, %p1476_p1  ;;  %p1047_p8 = scmp.ne.s32.totalorder %s1469_s1, %s1046_s15 }
   0xf   : > { %p1053_p12 = scmp.lt.u32.totalorder %s1046_s15, %s1469_s1 }
  0x10   : > { %p1308_p9 = pneg %p1294_p7 }
  0x12   : > { %p1049_p10 = pnand %p1308_p9, %p1047_p8 }
  0x14   : > { %p1050_p11 = pneg %p1049_p10 }
  0x16   : > { %p1055_p13 = pnand %p1053_p12, %p1050_p11 }
  0x18   : > { %1058 = shalt.err (!%p1055_p13)
}
  0x19   : > { %s1059_s21 = scalar_lea.vmem %s218_s9, 512  ;;  %p1067_p6 = scmp.lt.s32.totalorder %s218_s9, %s218_s9 }
  0x1a   : > { %p1060_p0 = scmp.ne.s32.totalorder %s218_s9, %s1059_s21  ;;  %p1068_p1 = scmp.lt.s32.totalorder %s1059_s21, %s1059_s21 }
  0x1c   : > { %p1062_p2 = pnand %p1060_p0, %p1308_p9  ;;  %p1069_p4 = por %p1068_p1, %p1067_p6 }
  0x1e   : > { %p1063_p3 = pneg %p1062_p2 }
  0x20   : > { %p1070_p5 = pnand %p1069_p4, %p1063_p3 }
  0x22   : > { %1073 = shalt.err (!%p1070_p5)
}
  0x23   : > { %s1206_s22 = smov 128   ;;  %s1207_s23 = smov 8  }
  0x24   : > { %954 = dma.hbm_to_vmem [thread:$0]  (!%p1294_p7), %s1469_s1, 512, %s218_s9, [#allocation5], %s1206_s22, %s1206_s22, %s1207_s23  }
  0x25   : > { %s1074_s14 = scalar_lea.hbm %s1471_s3, 2048 }
  0x26   : > { %p1075_p8 = scmp.ne.s32.totalorder %s1471_s3, %s1074_s14  ;;  %p1081_p5 = scmp.lt.u32.totalorder %s1074_s14, %s1471_s3 }
  0x28   : > { %p1077_p1 = pnand %p1075_p8, %p1308_p9 }
  0x2a   : > { %p1078_p4 = pneg %p1077_p1 }
  0x2c   : > { %p1083_p10 = pnand %p1081_p5, %p1078_p4 }
  0x2e   : > { %1086 = shalt.err (!%p1083_p10)
}
  0x2f   : > { %s1087_s9 = scalar_lea.vmem %s1298_s12, 2048  ;;  %p1095_p0 = scmp.lt.s32.totalorder %s1298_s12, %s1298_s12 }
  0x30   : > { %p1088_p11 = scmp.ne.s32.totalorder %s1298_s12, %s1087_s9  ;;  %p1096_p2 = scmp.lt.s32.totalorder %s1087_s9, %s1087_s9 }
  0x32   : > { %p1090_p12 = pnand %p1088_p11, %p1308_p9  ;;  %p1097_p3 = por %p1096_p2, %p1095_p0 }
  0x34   : > { %p1091_p13 = pneg %p1090_p12 }
  0x36   : > { %p1098_p6 = pnand %p1097_p3, %p1091_p13 }
  0x38   : > { %1101 = shalt.err (!%p1098_p6)
}
  0x39   : > { %s1208_s20 = smov 64   ;;  %s1209_s21 = smov 4  }
  0x3a   : > { %957 = dma.hbm_to_vmem [thread:$0]  (!%p1294_p7), %s1471_s3, 2048, %s1298_s12, [#allocation5], %s1208_s20, %s1208_s20, %s1209_s21  }
  0x3b   : > { %s1210_s24 = smov [#allocation7]   ;;  %s1348_s11 = sadd.s32 1, %s1202_s27  }
  0x3c   : > { %s249_s8 = sshll.u32 %s1210_s24, 4  ;;  %s1102_s15 = scalar_lea.hbm %s1473_s5, 1024  ;;  %s250_s8 = int_to_ptr.vmem [resolvable:$true] %s249_s8 }
  0x3d   : > { %p1103_p8 = scmp.ne.s32.totalorder %s1473_s5, %s1102_s15  ;;  %p1109_p5 = scmp.lt.u32.totalorder %s1102_s15, %s1473_s5 }
  0x3f   : > { %p1105_p1 = pnand %p1103_p8, %p1308_p9 }
  0x41   : > { %p1106_p4 = pneg %p1105_p1 }
  0x43   : > { %p1111_p10 = pnand %p1109_p5, %p1106_p4 }
  0x45   : > { %1114 = shalt.err (!%p1111_p10)
}
  0x46   : > { %s1115_s12 = scalar_lea.vmem %s250_s8, 1024  ;;  %p1123_p0 = scmp.lt.s32.totalorder %s250_s8, %s250_s8 }
  0x47   : > { %p1116_p11 = scmp.ne.s32.totalorder %s250_s8, %s1115_s12  ;;  %p1124_p2 = scmp.lt.s32.totalorder %s1115_s12, %s1115_s12 }
  0x49   : > { %p1118_p12 = pnand %p1116_p11, %p1308_p9  ;;  %p1125_p3 = por %p1124_p2, %p1123_p0 }
  0x4b   : > { %p1119_p13 = pneg %p1118_p12 }
  0x4d   : > { %p1126_p6 = pnand %p1125_p3, %p1119_p13 }
  0x4f   : > { %1129 = shalt.err (!%p1126_p6)
}
  0x50   : > { %960 = dma.hbm_to_vmem [thread:$0]  (!%p1294_p7), %s1473_s5, 1024, %s250_s8, [#allocation8], %s1208_s20, %s1208_s20, %s1209_s21  }
  0x51   : > { %s26_s18 = ssub.s32 %s1202_s27, %s1348_s11  ;;  %s29_s24 = sadd.s32 1, %s1198_s26 }
  0x52   : > { %p27_p9 = scmp.eq.s32.totalorder %s26_s18, 0  ;;  %p36_p8 = scmp.ne.s32.totalorder %s1198_s26, %s1194_s25 }
  0x53   : > { %p37_p1 = scmp.eq.s32.totalorder %s1202_s27, 0  ;;  %p968_p4 = scmp.lt.s32.totalorder %s1202_s27, 2 }
  0x54   : > { %s1376_s10 = scalar_select %p27_p9, %s1198_s26, %s29_s24  }
  0x55   : > { %p38_p5 = por %p37_p1, %p36_p8  ;;  %s266_s13 = sand.u32 1, %s1198_s26  }
  0x56   : > { %s844_s14 = sshll.u32 %s266_s13, 3  ;;  %s845_s15 = sshll.u32 %s1202_s27, 7 }
  0x57   : > { %s1383_s19 = scalar_lea.hbm %s1468_s0, %s845_s15  ;;  %s270_s20 = scalar_lea.vmem [#allocation2], %s844_s14 }
  0x58   : > { %s277_s21 = sshll.u32 %s270_s20, 4  ;;  %p1387_p7 = pnand %p968_p4, %p38_p5  ;;  %s1385_s21 = int_to_ptr.vmem [resolvable:$true] %s277_s21 }
  0x59   : > { %s267_s27 = scalar_lea.sflag [#allocation3], %s266_s13  ;;  %s1130_s9 = scalar_lea.hbm %s1383_s19, 128 }
  0x5a   : > { %p1131_p10 = scmp.ne.s32.totalorder %s1383_s19, %s1130_s9  ;;  %p1132_p11 = pneg %p1387_p7 }
  0x5b   : > { %s1135_s23 = scalar_lea.hbm %s1468_s0, 256  ;;  %p1136_p0 = scmp.lt.u32.totalorder %s1383_s19, %s1468_s0 }
  0x5c   : > { %p1133_p12 = pnand %p1132_p11, %p1131_p10  ;;  %p1137_p2 = scmp.lt.u32.totalorder %s1135_s23, %s1130_s9 }
  0x5d   : > { %p1139_p6 = scmp.lt.u32.totalorder %s1130_s9, %s1383_s19 }
  0x5e   : > { %p1134_p13 = pneg %p1133_p12  ;;  %p1138_p3 = por %p1137_p2, %p1136_p0 }
  0x60   : > { %p1140_p9 = por %p1139_p6, %p1138_p3 }
  0x62   : > { %p1141_p8 = pnand %p1140_p9, %p1134_p13 }
  0x64   : > { %1144 = shalt.err (!%p1141_p8)
}
  0x65   : > { %s1145_s13 = scalar_lea.vmem %s1385_s21, 128  ;;  %s1211_s14 = smov [#allocation2]  }
  0x66   : > { %p1146_p1 = scmp.ne.s32.totalorder %s1385_s21, %s1145_s13  ;;  %s1150_s15 = sshll.u32 %s1211_s14, 4  ;;  %s1151_s15 = int_to_ptr.vmem [resolvable:$false] %s1150_s15 }
  0x67   : > { %s1152_s16 = scalar_lea.vmem %s1151_s15, 256  ;;  %p1153_p10 = scmp.lt.s32.totalorder %s1385_s21, %s1151_s15 }
  0x68   : > { %p1148_p4 = pnand %p1146_p1, %p1132_p11  ;;  %p1154_p12 = scmp.lt.s32.totalorder %s1152_s16, %s1145_s13 }
  0x6a   : > { %p1149_p5 = pneg %p1148_p4  ;;  %p1155_p0 = por %p1154_p12, %p1153_p10 }
  0x6c   : > { %p1156_p2 = pnand %p1155_p0, %p1149_p5 }
  0x6e   : > { %1159 = shalt.err (!%p1156_p2)
}
  0x6f   : > { %964 = dma.hbm_to_vmem [thread:$0]  (!%p1387_p7), %s1383_s19, 128, %s1385_s21, %s267_s27  }
  0x70   : > { %p1484_p13 = scmp.ne.s32.totalorder %s1480_s30, 0 }
  0x71   : > { %s288_s17 = sand.u32 (!%p1484_p13), 1, %s1194_s25   ;;  %p1485_p11 = scmp.ne.s32.totalorder (!%p1484_p13), %s1479_s29, 0 }
  0x72   : > { %286 = sbr.rel (%p1484_p13) target bundleno = 1390 (0x56e), region = 48  ;;  %s847_s20 = sshll.u32 (!%p1484_p13), %s288_s17, 3 }
  0x73   : > { %s289_s9 = scalar_lea.sflag (!%p1484_p13), [#allocation3], %s288_s17  ;;  %s292_s12 = scalar_lea.vmem (!%p1484_p13), [#allocation2], %s847_s20 }
  0x79   : > { %1177 = dma.done.wait (%p1485_p11), %s289_s9, 128  }
  0x7a   : > { %1179 = vsyncadd (%p1485_p11), %s289_s9, 4294967168  ;;  %p1486_p3 = scmp.eq.s32.totalorder %s1274_s28, 0 }
  0x7c   : > { %1181 = dma.done.wait (%p1486_p3), [#allocation5], 2560   ;;  %p1487_p6 = pmov %p1486_p3 }
  0x7d   : > { %p1488_p7 = pmov %p1486_p3 }
  0x7e   : > { %1183 = vsyncadd (%p1487_p6), [#allocation5], 4294964736 }
  0x7f   : > { %1185 = dma.done.wait (%p1488_p7), [#allocation8], 1024   ;;  %p1489_p9 = pmov %p1486_p3 }
  0x80   : > { %v1212_v0 = vmov 0   ;;  %v1014_v1 = vld [vmem:[#allocation4 + $0x4] ss:$8 sps:$4 sm:$0xff]   ;;  %v1016_v2 = vld [vmem:[#allocation4] ss:$8 sps:$4 sm:$0xff]   ;;  %v339_v5 = vld [vmem:[%s292_s12] sm:$0xff]  ;;  %v347_v30 = vlaneseq }
  0x81   : > { %1187 = vsyncadd (%p1489_p9), [#allocation8], 4294966272  ;;  %413 = vmatprep.mubr.bf16.mxu0 %v1212_v0  ;;  %381 = vmatprep.subr.bf16.mxu0 %v1014_v1  ;;  %v1017_v3 = vld [vmem:[#allocation4 + $0x14] ss:$8 sps:$4 sm:$0xff]   ;;  %v1019_v4 = vld [vmem:[#allocation4 + $0x10] ss:$8 sps:$4 sm:$0xff]   ;;  %v340_v9 = vpack.c.bf16 %v339_v5, %v339_v5 }
  0x82   : > { %382 = vmatpush1.bf16.msra.mxu0 %v1016_v2  ;;  %v1020_v6 = vld [vmem:[#allocation6 + $0x40] sm:$0xff]   ;;  %v1022_v8 = vld [vmem:[#allocation6 + $0x48] sm:$0xff]   ;;  %vm377_vm0 = vcmask 261120   ;;  %v1024_v11 = vld [vmem:[#allocation6 + $0x50] sm:$0xff]   ;;  %v1213_v24 = vmov 0.0   ;;  %v348_v31 = vshrl.u32 %v347_v30, 7 }
  0x83   : > { %383 = vmatprep.subr.bf16.mxu0 %v1017_v3  ;;  %v1021_v7 = vld [vmem:[#allocation6] sm:$0xff]   ;;  %886 = vmatprep.subr.bf16.mxu1 %v1020_v6  ;;  %v1023_v10 = vld [vmem:[#allocation6 + $0x8] sm:$0xff]   ;;  %v1025_v12 = vld [vmem:[#allocation6 + $0x10] sm:$0xff]   ;;  %vm1214_vm1 = vmmov 0   ;;  %p334_p8 = scmp.lt.s32.totalorder %s1274_s28, 1  ;;  %vm742_vm4 = vcmask 31744  }
  0x84   : > { %887 = vmatpush3.bf16.msra.mxu1 %v1021_v7  ;;  %v1026_v13 = vld [vmem:[#allocation6 + $0x58] sm:$0xff]   ;;  %v1028_v15 = vld [vmem:[#allocation6 + $0x60] sm:$0xff]   ;;  %v1030_v17 = vld [vmem:[#allocation6 + $0x68] sm:$0xff]   ;;  %v349_v32 = vsub.s32 0, %v348_v31  ;;  %v353_v34 = vsub.s32 1, %v348_v31 }
  0x85   : > { %888 = vmatprep.subr.bf16.mxu1 %v1022_v8  ;;  %v1027_v14 = vld [vmem:[#allocation6 + $0x18] sm:$0xff]   ;;  %v1029_v16 = vld [vmem:[#allocation6 + $0x20] sm:$0xff]   ;;  %v1031_v18 = vld [vmem:[#allocation6 + $0x28] sm:$0xff]   ;;  %s1495_s28 = smov (!%p334_p8, %s1274_s28), 1 }
  0x86   : > { %384 = vmatpush1.bf16.msra.mxu0 %v1019_v4  ;;  %v1032_v19 = vld [vmem:[#allocation6 + $0x70] sm:$0xff]   ;;  %v1034_v21 = vld [vmem:[#allocation6 + $0x78] sm:$0xff]   ;;  %v1036_v23 = vld [vmem:[#allocation7] sm:$0xff]   ;;  %v720_v4 = vand.u32 127, %v347_v30  ;;  %s851_s22 = sshll.u32 %s1495_s28, 3 }
  0x87   : > { %v1033_v20 = vld [vmem:[#allocation6 + $0x30] sm:$0xff]   ;;  %v1035_v22 = vld [vmem:[#allocation6 + $0x38] sm:$0xff]   ;;  %917 = vmatprep.subr.bf16.mxu0 %v1213_v24  ;;  %v1037_v25 = vld [vmem:[#allocation7 + $0x8] sm:$0xff]   ;;  %s337_s24 = scalar_lea.vmem %s1475_s7, %s851_s22 }
  0x88   : > { %889 = vmatpush3.bf16.msra.mxu1 %v1023_v10  ;;  %v1038_v26 = vld [vmem:[#allocation7 + $0x10] sm:$0xff]   ;;  %v1039_v27 = vld [vmem:[#allocation7 + $0x18] sm:$0xff]   ;;  %v1040_v28 = vld [vmem:[#allocation7 + $0x20] sm:$0xff]  }
  0x89   : > { %856 = vmatmul.mubr.msk.bf16.vlgmr.msra.gmra.mrb[0].mxu0 %vm377_vm0, %v340_v9  ;;  %890 = vmatprep.subr.bf16.mxu1 %v1024_v11  ;;  %v1041_v29 = vld [vmem:[#allocation7 + $0x28] sm:$0xff]   ;;  %v345_v33 = vld [vmem:[%s1470_s2] sm:$0x3]  ;;  %v1043_v48 = vld [vmem:[#allocation7 + $0x38] sm:$0xff]  }
  0x8a   : > { %918 = vmatpush3.bf16.msra.mxu0 %v1036_v23  ;;  %v350_v35 = vrot.slane %v345_v33, %v349_v32  ;;  %v354_v36 = vrot.slane %v345_v33, %v353_v34  ;;  %v1042_v47 = vld [vmem:[#allocation7 + $0x30] sm:$0xff]   ;;  %933 = vmatprep.mubr.msk.bf16.mxu0 %vm1214_vm1, %v1213_v24 }
  0x8b   : > { %919 = vmatprep.subr.bf16.mxu0 %v1213_v24  ;;  %v857_v50 = vld [vmem:[%s1472_s4] ss:$0 sm:$0xff] }
  0x8c   : > { %891 = vmatpush3.bf16.msra.mxu1 %v1025_v12  ;;  %v874_v58 = vld [vmem:[%s1474_s6] ss:$0 sm:$0xff] }
  0x8d   : > { %892 = vmatprep.subr.bf16.mxu1 %v1026_v13 }
  0x8e   : > { %920 = vmatpush3.bf16.msra.mxu0 %v1037_v25 }
  0x8f   : > { %921 = vmatprep.subr.bf16.mxu0 %v1213_v24 }
  0x90   : > { %893 = vmatpush3.bf16.msra.mxu1 %v1027_v14 }
  0x91   : > { %894 = vmatprep.subr.bf16.mxu1 %v1028_v15 }
  0x92   : > { %922 = vmatpush3.bf16.msra.mxu0 %v1038_v26 }
  0x93   : > { %923 = vmatprep.subr.bf16.mxu0 %v1213_v24 }
  0x94   : > { %895 = vmatpush3.bf16.msra.mxu1 %v1029_v16 }
  0x95   : > { %896 = vmatprep.subr.bf16.mxu1 %v1030_v17 }
  0x96   : > { %924 = vmatpush3.bf16.msra.mxu0 %v1039_v27 }
  0x97   : > { %925 = vmatprep.subr.bf16.mxu0 %v1213_v24 }
  0x98   : > { %897 = vmatpush3.bf16.msra.mxu1 %v1031_v18 }
  0x99   : > { %898 = vmatprep.subr.bf16.mxu1 %v1032_v19 }
  0x9a   : > { %926 = vmatpush3.bf16.msra.mxu0 %v1040_v28 }
  0x9b   : > { %927 = vmatprep.subr.bf16.mxu0 %v1213_v24 }
  0x9c   : > { %899 = vmatpush3.bf16.msra.mxu1 %v1033_v20 }
  0x9d   : > { %900 = vmatprep.subr.bf16.mxu1 %v1034_v21 }
  0x9e   : > { %928 = vmatpush3.bf16.msra.mxu0 %v1041_v29 }
  0x9f   : > { %929 = vmatprep.subr.bf16.mxu0 %v1213_v24 }
  0xa0   : > { %901 = vmatpush3.bf16.msra.mxu1 %v1035_v22 }
  0xa2   : > { %930 = vmatpush3.bf16.msra.mxu0 %v1042_v47 }
  0xa3   : > { %931 = vmatprep.subr.bf16.mxu0 %v1213_v24 }
  0xa6   : > { %932 = vmatpush3.bf16.msra.mxu0 %v1043_v48 }
 0x15c   : > { %v415_v37 = vpop.f32.mrb[0].mxu0 }
 0x15d   : > { %v416_v38 = vadd.f32 %v415_v37, %v350_v35  ;;  %v417_v39 = vpop.f32.mrb[1].mxu0 }
 0x15e   : > { %v418_v40 = vadd.f32 %v417_v39, %v354_v36  ;;  %v419_v41 = vpop.f32.mrb[2].mxu0 }
 0x15f   : > { %v422_v42 = vmax.f32 %v416_v38, 0.0  ;;  %v420_v43 = vpop.f32.mrb[3].mxu0 }
 0x160   : > { %v423_v44 = vmax.f32 %v418_v40, 0.0 }
 0x161   : > { %v424_v46 = vpack.c.bf16 %v422_v42, %v422_v42 }
 0x162   : > { %v425_v45 = vpack.c.bf16 %v423_v44, %v423_v44 }
 0x164   : > { %593 = vmatprep.mubr.bf16.mxu1 %v425_v45 }
 0x165   : > { %594 = vmatmul.mubr.bf16.vlgmr.msra.gmra.mrb[0].mxu1 %v424_v46 }
 0x238   : > { %v902_v49 = vpop.f32.mrb[0].mxu1 }
 0x239   : > { %v903_v51 = vpop.f32.mrb[1].mxu1 }
 0x23a   : > { %v904_v52 = vadd.f32 %v903_v51, %v902_v49  ;;  %v905_v53 = vpop.f32.mrb[2].mxu1 }
 0x23b   : > { %v906_v54 = vpop.f32.mrb[3].mxu1 }
 0x23c   : > { %v596_v55 = vadd.f32 %v904_v52, %v857_v50 }
 0x23e   : > { %v601_v56 = vmax.f32 %v596_v55, 0.0 }
 0x240   : > { %v602_v57 = vpack.c.bf16 %v601_v56, %v601_v56 }
 0x242   : > { %934 = vmatmul.mubr.bf16.vlgmr.msra.gmra.mrb[4].mxu0 %v602_v57 }
 0x315   : > { %v708_v59 = vpop.f32.mrb[4].mxu0 }
 0x316   : > { %v709_v60 = vadd.f32 %v874_v58, %v708_v59  ;;  %v935_v61 = vpop.f32.mrb[5].mxu0 }
 0x317   : > { %v711_v62 = vpop.f32.mrb[6].mxu0 }
 0x318   : > { %714 = vmax.xlane.f32.xlu0 %v709_v60  ;;  %v936_v63 = vpop.f32.mrb[7].mxu0 }
 0x3a5   : > { %v715_v0 = vpop.xlane.xlu0 %714 }
 0x3a6   : > { %v716_v1 = vsub.f32 %v709_v60, %v715_v0 }
 0x3a8   : > { %v717_v2 = vmul.f32 1.442695, %v716_v1 }
 0x3aa   : > { %1044 = vpow2.f32 %v717_v2 }
 0x3b4   : > { %v1045_v3 = vpop.eup %1044 }
 0x3b5   : > { %721 = vmax.xlane.f32.xlu0 %v1045_v3 }
 0x442   : > { %v722_v5 = vpop.xlane.xlu0 %721 }
 0x443   : > { %vm723_vm2 = vcmp.eq.f32.partialorder %v1045_v3, %v722_v5 }
 0x444   : > { %v724_v6 = vsel %vm723_vm2, %v720_v4, 128 }
 0x445   : > { %v726_v7 = vshra.s32 %v724_v6, 16  ;;  %v725_v9 = vand.u32 65535, %v724_v6 }
 0x447   : > { %v728_v8 = vcvt.s32.f32 %v726_v7  ;;  %v727_v11 = vcvt.s32.f32 %v725_v9 }
 0x449   : > { %729 = vmin.xlane.f32.xlu1 %v728_v8 }
 0x4d6   : > { %v730_v10 = vpop.xlane.xlu1 %729 }
 0x4d7   : > { %vm731_vm3 = vcmp.eq.f32.partialorder %v728_v8, %v730_v10  ;;  %v736_v13 = vcvt.f32.s32 %v730_v10 }
 0x4d8   : > { %v732_v12 = vsel %vm731_vm3, %v727_v11, inf }
 0x4d9   : > { %733 = vmin.xlane.f32.xlu1 %v732_v12  ;;  %v737_v15 = vshll.u32 %v736_v13, 16 }
 0x566   : > { %v734_v14 = vpop.xlane.xlu1 %733 }
 0x567   : > { %v735_v16 = vcvt.f32.s32 %v734_v14 }
 0x569   : > { %v738_v17 = vadd.s32 %v737_v15, %v735_v16 }
 0x56b   : > { %vm739_vm5 = vcmp.eq.s32.totalorder %v720_v4, %v738_v17 }
 0x56c   : > { %v883_v18 = vsel %vm739_vm5, 1.0, %v1213_v24 }
 0x56d   : > { %743 = vst.msk [vmem:[%s337_s24] sm:$0xff] %vm742_vm4, %v883_v18 }
 0x56e PF: > { %p19_p1 = scmp.ge.s32.totalorder %s1348_s11, 4   ;;  %s1490_s24 = smov %s1194_s25 }
 0x56f   : > { %s1491_s25 = smov %s1198_s26  ;;  %s1492_s26 = smov %s1376_s10 }
 0x570   : > { %s1493_s27 = smov %s1348_s11  ;;  %21 = sbr.rel (!%p19_p1) target bundleno = 5 (0x5), region = 100 }
 0x577   :  { %763 = vsyncpa [#allocation3], 1 }
 0x578   :  { %765 = vsyncpa [#allocation3 + $0x1], 1 }
 0x579   :  { %766 = vsyncpa [#allocation5], 1 }
 0x57a   :  { %767 = vsyncpa [#allocation8], 1 }

// kernel: tpu_custom_call.1
= control target key start
LH: loop header
LB: loop body
LE: loop exit
PB: predicated region body
PF: predicated region fallthrough
CT: control target
= control target key end

     0   :  { %12 = vsyncpa [#allocation3], 0  ;;  %s1468_s0 = inlined_call_operand.hbm [shape: f32[16,32], index: 0, kind: input, shape index: {}]   ;;  %s1469_s1 = inlined_call_operand.hbm [shape: bf16[32,256], index: 1, kind: input, shape index: {}]   ;;  %s1470_s2 = inlined_call_operand.vmem [shape: f32[1,256], index: 2, kind: input, shape index: {}]   ;;  %s1471_s3 = inlined_call_operand.hbm [shape: bf16[256,128], index: 3, kind: input, shape index: {}]   ;;  %s1472_s4 = inlined_call_operand.vmem [shape: f32[1,128], index: 4, kind: input, shape index: {}]   ;;  %s1473_s5 = inlined_call_operand.hbm [shape: bf16[128,128], index: 5, kind: input, shape index: {}]   ;;  %s1474_s6 = inlined_call_operand.vmem [shape: f32[1,128], index: 6, kind: input, shape index: {}]   ;;  %s1475_s7 = inlined_call_operand.vmem [shape: f32[16,4], index: 7, kind: output, shape index: {}]  }
   0x1   :  { %14 = vsyncpa [#allocation3 + $0x1], 0 }
   0x2   :  { %15 = vsyncpa [#allocation5], 0 }
   0x3   :  { %16 = vsyncpa [#allocation8], 0  ;;  %s1255_s24 = smov 0   ;;  %s1257_s25 = smov 0  }
   0x4   :  { %s1259_s26 = smov 0   ;;  %s1261_s27 = smov 0  }
   0x5 LB: > { %s1274_s28 = sadd.s32 4294967295, %s1202_s27   ;;  %p42_p0 = scmp.ne.s32.totalorder %s1194_s25, %s1190_s24  ;;  %s1202_s27 = sphi %s1261_s27, %s1493_s27   ;;  %s1198_s26 = sphi %s1259_s26, %s1492_s26   ;;  %s1194_s25 = sphi %s1257_s25, %s1491_s25   ;;  %s1190_s24 = sphi %s1255_s24, %s1490_s24  }
   0x6   : > { %p1476_p1 = scmp.eq.s32.totalorder %s1274_s28, 0  ;;  %p839_p2 = scmp.ge.s32.totalorder %s1202_s27, 1 }
   0x7   : > { %p205_p3 = scmp.lt.s32.totalorder %s1202_s27, 3  ;;  %s1204_s8 = smov [#allocation4]  }
   0x8   : > { %p1282_p4 = por %p1476_p1, %p42_p0  ;;  %s217_s9 = sshll.u32 %s1204_s8, 4  ;;  %s218_s9 = int_to_ptr.vmem [resolvable:$true] %s217_s9 }
   0x9   : > { %p1286_p5 = pnand %p839_p2, %p205_p3  ;;  %s1205_s11 = smov [#allocation6]  }
   0xa   : > { %s1479_s29 = scalar_select %p1282_p4, 1, 0 }
   0xb   : > { %s1480_s30 = scalar_select %p1286_p5, 1, 0 }
   0xc   : > { %p951_p6 = pneg %p1286_p5  ;;  %s233_s12 = sshll.u32 %s1205_s11, 4  ;;  %s1298_s12 = int_to_ptr.vmem [resolvable:$true] %s233_s12 }
   0xd   : > { %s1046_s15 = scalar_lea.hbm %s1469_s1, 512 }
   0xe   : > { %p1294_p7 = pnand %p951_p6, %p1476_p1  ;;  %p1047_p8 = scmp.ne.s32.totalorder %s1469_s1, %s1046_s15 }
   0xf   : > { %p1053_p12 = scmp.lt.u32.totalorder %s1046_s15, %s1469_s1 }
  0x10   : > { %p1308_p9 = pneg %p1294_p7 }
  0x12   : > { %p1049_p10 = pnand %p1308_p9, %p1047_p8 }
  0x14   : > { %p1050_p11 = pneg %p1049_p10 }
  0x16   : > { %p1055_p13 = pnand %p1053_p12, %p1050_p11 }
  0x18   : > { %1058 = shalt.err (!%p1055_p13)
}
  0x19   : > { %s1059_s21 = scalar_lea.vmem %s218_s9, 512  ;;  %p1067_p6 = scmp.lt.s32.totalorder %s218_s9, %s218_s9 }
  0x1a   : > { %p1060_p0 = scmp.ne.s32.totalorder %s218_s9, %s1059_s21  ;;  %p1068_p1 = scmp.lt.s32.totalorder %s1059_s21, %s1059_s21 }
  0x1c   : > { %p1062_p2 = pnand %p1060_p0, %p1308_p9  ;;  %p1069_p4 = por %p1068_p1, %p1067_p6 }
  0x1e   : > { %p1063_p3 = pneg %p1062_p2 }
  0x20   : > { %p1070_p5 = pnand %p1069_p4, %p1063_p3 }
  0x22   : > { %1073 = shalt.err (!%p1070_p5)
}
  0x23   : > { %s1206_s22 = smov 128   ;;  %s1207_s23 = smov 8  }
  0x24   : > { %954 = dma.hbm_to_vmem [thread:$0]  (!%p1294_p7), %s1469_s1, 512, %s218_s9, [#allocation5], %s1206_s22, %s1206_s22, %s1207_s23  }
  0x25   : > { %s1074_s14 = scalar_lea.hbm %s1471_s3, 2048 }
  0x26   : > { %p1075_p8 = scmp.ne.s32.totalorder %s1471_s3, %s1074_s14  ;;  %p1081_p5 = scmp.lt.u32.totalorder %s1074_s14, %s1471_s3 }
  0x28   : > { %p1077_p1 = pnand %p1075_p8, %p1308_p9 }
  0x2a   : > { %p1078_p4 = pneg %p1077_p1 }
  0x2c   : > { %p1083_p10 = pnand %p1081_p5, %p1078_p4 }
  0x2e   : > { %1086 = shalt.err (!%p1083_p10)
}
  0x2f   : > { %s1087_s9 = scalar_lea.vmem %s1298_s12, 2048  ;;  %p1095_p0 = scmp.lt.s32.totalorder %s1298_s12, %s1298_s12 }
  0x30   : > { %p1088_p11 = scmp.ne.s32.totalorder %s1298_s12, %s1087_s9  ;;  %p1096_p2 = scmp.lt.s32.totalorder %s1087_s9, %s1087_s9 }
  0x32   : > { %p1090_p12 = pnand %p1088_p11, %p1308_p9  ;;  %p1097_p3 = por %p1096_p2, %p1095_p0 }
  0x34   : > { %p1091_p13 = pneg %p1090_p12 }
  0x36   : > { %p1098_p6 = pnand %p1097_p3, %p1091_p13 }
  0x38   : > { %1101 = shalt.err (!%p1098_p6)
}
  0x39   : > { %s1208_s20 = smov 64   ;;  %s1209_s21 = smov 4  }
  0x3a   : > { %957 = dma.hbm_to_vmem [thread:$0]  (!%p1294_p7), %s1471_s3, 2048, %s1298_s12, [#allocation5], %s1208_s20, %s1208_s20, %s1209_s21  }
  0x3b   : > { %s1210_s24 = smov [#allocation7]   ;;  %s1348_s11 = sadd.s32 1, %s1202_s27  }
  0x3c   : > { %s249_s8 = sshll.u32 %s1210_s24, 4  ;;  %s1102_s15 = scalar_lea.hbm %s1473_s5, 1024  ;;  %s250_s8 = int_to_ptr.vmem [resolvable:$true] %s249_s8 }
  0x3d   : > { %p1103_p8 = scmp.ne.s32.totalorder %s1473_s5, %s1102_s15  ;;  %p1109_p5 = scmp.lt.u32.totalorder %s1102_s15, %s1473_s5 }
  0x3f   : > { %p1105_p1 = pnand %p1103_p8, %p1308_p9 }
  0x41   : > { %p1106_p4 = pneg %p1105_p1 }
  0x43   : > { %p1111_p10 = pnand %p1109_p5, %p1106_p4 }
  0x45   : > { %1114 = shalt.err (!%p1111_p10)
}
  0x46   : > { %s1115_s12 = scalar_lea.vmem %s250_s8, 1024  ;;  %p1123_p0 = scmp.lt.s32.totalorder %s250_s8, %s250_s8 }
  0x47   : > { %p1116_p11 = scmp.ne.s32.totalorder %s250_s8, %s1115_s12  ;;  %p1124_p2 = scmp.lt.s32.totalorder %s1115_s12, %s1115_s12 }
  0x49   : > { %p1118_p12 = pnand %p1116_p11, %p1308_p9  ;;  %p1125_p3 = por %p1124_p2, %p1123_p0 }
  0x4b   : > { %p1119_p13 = pneg %p1118_p12 }
  0x4d   : > { %p1126_p6 = pnand %p1125_p3, %p1119_p13 }
  0x4f   : > { %1129 = shalt.err (!%p1126_p6)
}
  0x50   : > { %960 = dma.hbm_to_vmem [thread:$0]  (!%p1294_p7), %s1473_s5, 1024, %s250_s8, [#allocation8], %s1208_s20, %s1208_s20, %s1209_s21  }
  0x51   : > { %s26_s18 = ssub.s32 %s1202_s27, %s1348_s11  ;;  %s29_s24 = sadd.s32 1, %s1198_s26 }
  0x52   : > { %p27_p9 = scmp.eq.s32.totalorder %s26_s18, 0  ;;  %p36_p8 = scmp.ne.s32.totalorder %s1198_s26, %s1194_s25 }
  0x53   : > { %p37_p1 = scmp.eq.s32.totalorder %s1202_s27, 0  ;;  %p968_p4 = scmp.lt.s32.totalorder %s1202_s27, 2 }
  0x54   : > { %s1376_s10 = scalar_select %p27_p9, %s1198_s26, %s29_s24  }
  0x55   : > { %p38_p5 = por %p37_p1, %p36_p8  ;;  %s266_s13 = sand.u32 1, %s1198_s26  }
  0x56   : > { %s844_s14 = sshll.u32 %s266_s13, 3  ;;  %s845_s15 = sshll.u32 %s1202_s27, 7 }
  0x57   : > { %s1383_s19 = scalar_lea.hbm %s1468_s0, %s845_s15  ;;  %s270_s20 = scalar_lea.vmem [#allocation2], %s844_s14 }
  0x58   : > { %s277_s21 = sshll.u32 %s270_s20, 4  ;;  %p1387_p7 = pnand %p968_p4, %p38_p5  ;;  %s1385_s21 = int_to_ptr.vmem [resolvable:$true] %s277_s21 }
  0x59   : > { %s267_s27 = scalar_lea.sflag [#allocation3], %s266_s13  ;;  %s1130_s9 = scalar_lea.hbm %s1383_s19, 128 }
  0x5a   : > { %p1131_p10 = scmp.ne.s32.totalorder %s1383_s19, %s1130_s9  ;;  %p1132_p11 = pneg %p1387_p7 }
  0x5b   : > { %s1135_s23 = scalar_lea.hbm %s1468_s0, 256  ;;  %p1136_p0 = scmp.lt.u32.totalorder %s1383_s19, %s1468_s0 }
  0x5c   : > { %p1133_p12 = pnand %p1132_p11, %p1131_p10  ;;  %p1137_p2 = scmp.lt.u32.totalorder %s1135_s23, %s1130_s9 }
  0x5d   : > { %p1139_p6 = scmp.lt.u32.totalorder %s1130_s9, %s1383_s19 }
  0x5e   : > { %p1134_p13 = pneg %p1133_p12  ;;  %p1138_p3 = por %p1137_p2, %p1136_p0 }
  0x60   : > { %p1140_p9 = por %p1139_p6, %p1138_p3 }
  0x62   : > { %p1141_p8 = pnand %p1140_p9, %p1134_p13 }
  0x64   : > { %1144 = shalt.err (!%p1141_p8)
}
  0x65   : > { %s1145_s13 = scalar_lea.vmem %s1385_s21, 128  ;;  %s1211_s14 = smov [#allocation2]  }
  0x66   : > { %p1146_p1 = scmp.ne.s32.totalorder %s1385_s21, %s1145_s13  ;;  %s1150_s15 = sshll.u32 %s1211_s14, 4  ;;  %s1151_s15 = int_to_ptr.vmem [resolvable:$false] %s1150_s15 }
  0x67   : > { %s1152_s16 = scalar_lea.vmem %s1151_s15, 256  ;;  %p1153_p10 = scmp.lt.s32.totalorder %s1385_s21, %s1151_s15 }
  0x68   : > { %p1148_p4 = pnand %p1146_p1, %p1132_p11  ;;  %p1154_p12 = scmp.lt.s32.totalorder %s1152_s16, %s1145_s13 }
  0x6a   : > { %p1149_p5 = pneg %p1148_p4  ;;  %p1155_p0 = por %p1154_p12, %p1153_p10 }
  0x6c   : > { %p1156_p2 = pnand %p1155_p0, %p1149_p5 }
  0x6e   : > { %1159 = shalt.err (!%p1156_p2)
}
  0x6f   : > { %964 = dma.hbm_to_vmem [thread:$0]  (!%p1387_p7), %s1383_s19, 128, %s1385_s21, %s267_s27  }
  0x70   : > { %p1484_p13 = scmp.ne.s32.totalorder %s1480_s30, 0 }
  0x71   : > { %s288_s17 = sand.u32 (!%p1484_p13), 1, %s1194_s25   ;;  %p1485_p11 = scmp.ne.s32.totalorder (!%p1484_p13), %s1479_s29, 0 }
  0x72   : > { %286 = sbr.rel (%p1484_p13) target bundleno = 1390 (0x56e), region = 48  ;;  %s847_s20 = sshll.u32 (!%p1484_p13), %s288_s17, 3 }
  0x73   : > { %s289_s9 = scalar_lea.sflag (!%p1484_p13), [#allocation3], %s288_s17  ;;  %s292_s12 = scalar_lea.vmem (!%p1484_p13), [#allocation2], %s847_s20 }
  0x79   : > { %1177 = dma.done.wait (%p1485_p11), %s289_s9, 128  }
  0x7a   : > { %1179 = vsyncadd (%p1485_p11), %s289_s9, 4294967168  ;;  %p1486_p3 = scmp.eq.s32.totalorder %s1274_s28, 0 }
  0x7c   : > { %1181 = dma.done.wait (%p1486_p3), [#allocation5], 2560   ;;  %p1487_p6 = pmov %p1486_p3 }
  0x7d   : > { %p1488_p7 = pmov %p1486_p3 }
  0x7e   : > { %1183 = vsyncadd (%p1487_p6), [#allocation5], 4294964736 }
  0x7f   : > { %1185 = dma.done.wait (%p1488_p7), [#allocation8], 1024   ;;  %p1489_p9 = pmov %p1486_p3 }
  0x80   : > { %v1212_v0 = vmov 0   ;;  %v1014_v1 = vld [vmem:[#allocation4 + $0x4] ss:$8 sps:$4 sm:$0xff]   ;;  %v1016_v2 = vld [vmem:[#allocation4] ss:$8 sps:$4 sm:$0xff]   ;;  %v339_v5 = vld [vmem:[%s292_s12] sm:$0xff]  ;;  %v347_v30 = vlaneseq }
  0x81   : > { %1187 = vsyncadd (%p1489_p9), [#allocation8], 4294966272  ;;  %413 = vmatprep.mubr.bf16.mxu0 %v1212_v0  ;;  %381 = vmatprep.subr.bf16.mxu0 %v1014_v1  ;;  %v1017_v3 = vld [vmem:[#allocation4 + $0x14] ss:$8 sps:$4 sm:$0xff]   ;;  %v1019_v4 = vld [vmem:[#allocation4 + $0x10] ss:$8 sps:$4 sm:$0xff]   ;;  %v340_v9 = vpack.c.bf16 %v339_v5, %v339_v5 }
  0x82   : > { %382 = vmatpush1.bf16.msra.mxu0 %v1016_v2  ;;  %v1020_v6 = vld [vmem:[#allocation6 + $0x40] sm:$0xff]   ;;  %v1022_v8 = vld [vmem:[#allocation6 + $0x48] sm:$0xff]   ;;  %vm377_vm0 = vcmask 261120   ;;  %v1024_v11 = vld [vmem:[#allocation6 + $0x50] sm:$0xff]   ;;  %v1213_v24 = vmov 0.0   ;;  %v348_v31 = vshrl.u32 %v347_v30, 7 }
  0x83   : > { %383 = vmatprep.subr.bf16.mxu0 %v1017_v3  ;;  %v1021_v7 = vld [vmem:[#allocation6] sm:$0xff]   ;;  %886 = vmatprep.subr.bf16.mxu1 %v1020_v6  ;;  %v1023_v10 = vld [vmem:[#allocation6 + $0x8] sm:$0xff]   ;;  %v1025_v12 = vld [vmem:[#allocation6 + $0x10] sm:$0xff]   ;;  %vm1214_vm1 = vmmov 0   ;;  %p334_p8 = scmp.lt.s32.totalorder %s1274_s28, 1  ;;  %vm742_vm4 = vcmask 31744  }
  0x84   : > { %887 = vmatpush3.bf16.msra.mxu1 %v1021_v7  ;;  %v1026_v13 = vld [vmem:[#allocation6 + $0x58] sm:$0xff]   ;;  %v1028_v15 = vld [vmem:[#allocation6 + $0x60] sm:$0xff]   ;;  %v1030_v17 = vld [vmem:[#allocation6 + $0x68] sm:$0xff]   ;;  %v349_v32 = vsub.s32 0, %v348_v31  ;;  %v353_v34 = vsub.s32 1, %v348_v31 }
  0x85   : > { %888 = vmatprep.subr.bf16.mxu1 %v1022_v8  ;;  %v1027_v14 = vld [vmem:[#allocation6 + $0x18] sm:$0xff]   ;;  %v1029_v16 = vld [vmem:[#allocation6 + $0x20] sm:$0xff]   ;;  %v1031_v18 = vld [vmem:[#allocation6 + $0x28] sm:$0xff]   ;;  %s1495_s28 = smov (!%p334_p8, %s1274_s28), 1 }
  0x86   : > { %384 = vmatpush1.bf16.msra.mxu0 %v1019_v4  ;;  %v1032_v19 = vld [vmem:[#allocation6 + $0x70] sm:$0xff]   ;;  %v1034_v21 = vld [vmem:[#allocation6 + $0x78] sm:$0xff]   ;;  %v1036_v23 = vld [vmem:[#allocation7] sm:$0xff]   ;;  %v720_v4 = vand.u32 127, %v347_v30  ;;  %s851_s22 = sshll.u32 %s1495_s28, 3 }
  0x87   : > { %v1033_v20 = vld [vmem:[#allocation6 + $0x30] sm:$0xff]   ;;  %v1035_v22 = vld [vmem:[#allocation6 + $0x38] sm:$0xff]   ;;  %917 = vmatprep.subr.bf16.mxu0 %v1213_v24  ;;  %v1037_v25 = vld [vmem:[#allocation7 + $0x8] sm:$0xff]   ;;  %s337_s24 = scalar_lea.vmem %s1475_s7, %s851_s22 }
  0x88   : > { %889 = vmatpush3.bf16.msra.mxu1 %v1023_v10  ;;  %v1038_v26 = vld [vmem:[#allocation7 + $0x10] sm:$0xff]   ;;  %v1039_v27 = vld [vmem:[#allocation7 + $0x18] sm:$0xff]   ;;  %v1040_v28 = vld [vmem:[#allocation7 + $0x20] sm:$0xff]  }
  0x89   : > { %856 = vmatmul.mubr.msk.bf16.vlgmr.msra.gmra.mrb[0].mxu0 %vm377_vm0, %v340_v9  ;;  %890 = vmatprep.subr.bf16.mxu1 %v1024_v11  ;;  %v1041_v29 = vld [vmem:[#allocation7 + $0x28] sm:$0xff]   ;;  %v345_v33 = vld [vmem:[%s1470_s2] sm:$0x3]  ;;  %v1043_v48 = vld [vmem:[#allocation7 + $0x38] sm:$0xff]  }
  0x8a   : > { %918 = vmatpush3.bf16.msra.mxu0 %v1036_v23  ;;  %v350_v35 = vrot.slane %v345_v33, %v349_v32  ;;  %v354_v36 = vrot.slane %v345_v33, %v353_v34  ;;  %v1042_v47 = vld [vmem:[#allocation7 + $0x30] sm:$0xff]   ;;  %933 = vmatprep.mubr.msk.bf16.mxu0 %vm1214_vm1, %v1213_v24 }
  0x8b   : > { %919 = vmatprep.subr.bf16.mxu0 %v1213_v24  ;;  %v857_v50 = vld [vmem:[%s1472_s4] ss:$0 sm:$0xff] }
  0x8c   : > { %891 = vmatpush3.bf16.msra.mxu1 %v1025_v12  ;;  %v874_v58 = vld [vmem:[%s1474_s6] ss:$0 sm:$0xff] }
  0x8d   : > { %892 = vmatprep.subr.bf16.mxu1 %v1026_v13 }
  0x8e   : > { %920 = vmatpush3.bf16.msra.mxu0 %v1037_v25 }
  0x8f   : > { %921 = vmatprep.subr.bf16.mxu0 %v1213_v24 }
  0x90   : > { %893 = vmatpush3.bf16.msra.mxu1 %v1027_v14 }
  0x91   : > { %894 = vmatprep.subr.bf16.mxu1 %v1028_v15 }
  0x92   : > { %922 = vmatpush3.bf16.msra.mxu0 %v1038_v26 }
  0x93   : > { %923 = vmatprep.subr.bf16.mxu0 %v1213_v24 }
  0x94   : > { %895 = vmatpush3.bf16.msra.mxu1 %v1029_v16 }
  0x95   : > { %896 = vmatprep.subr.bf16.mxu1 %v1030_v17 }
  0x96   : > { %924 = vmatpush3.bf16.msra.mxu0 %v1039_v27 }
  0x97   : > { %925 = vmatprep.subr.bf16.mxu0 %v1213_v24 }
  0x98   : > { %897 = vmatpush3.bf16.msra.mxu1 %v1031_v18 }
  0x99   : > { %898 = vmatprep.subr.bf16.mxu1 %v1032_v19 }
  0x9a   : > { %926 = vmatpush3.bf16.msra.mxu0 %v1040_v28 }
  0x9b   : > { %927 = vmatprep.subr.bf16.mxu0 %v1213_v24 }
  0x9c   : > { %899 = vmatpush3.bf16.msra.mxu1 %v1033_v20 }
  0x9d   : > { %900 = vmatprep.subr.bf16.mxu1 %v1034_v21 }
  0x9e   : > { %928 = vmatpush3.bf16.msra.mxu0 %v1041_v29 }
  0x9f   : > { %929 = vmatprep.subr.bf16.mxu0 %v1213_v24 }
  0xa0   : > { %901 = vmatpush3.bf16.msra.mxu1 %v1035_v22 }
  0xa2   : > { %930 = vmatpush3.bf16.msra.mxu0 %v1042_v47 }
  0xa3   : > { %931 = vmatprep.subr.bf16.mxu0 %v1213_v24 }
  0xa6   : > { %932 = vmatpush3.bf16.msra.mxu0 %v1043_v48 }
 0x15c   : > { %v415_v37 = vpop.f32.mrb[0].mxu0 }
 0x15d   : > { %v416_v38 = vadd.f32 %v415_v37, %v350_v35  ;;  %v417_v39 = vpop.f32.mrb[1].mxu0 }
 0x15e   : > { %v418_v40 = vadd.f32 %v417_v39, %v354_v36  ;;  %v419_v41 = vpop.f32.mrb[2].mxu0 }
 0x15f   : > { %v422_v42 = vmax.f32 %v416_v38, 0.0  ;;  %v420_v43 = vpop.f32.mrb[3].mxu0 }
 0x160   : > { %v423_v44 = vmax.f32 %v418_v40, 0.0 }
 0x161   : > { %v424_v46 = vpack.c.bf16 %v422_v42, %v422_v42 }
 0x162   : > { %v425_v45 = vpack.c.bf16 %v423_v44, %v423_v44 }
 0x164   : > { %593 = vmatprep.mubr.bf16.mxu1 %v425_v45 }
 0x165   : > { %594 = vmatmul.mubr.bf16.vlgmr.msra.gmra.mrb[0].mxu1 %v424_v46 }
 0x238   : > { %v902_v49 = vpop.f32.mrb[0].mxu1 }
 0x239   : > { %v903_v51 = vpop.f32.mrb[1].mxu1 }
 0x23a   : > { %v904_v52 = vadd.f32 %v903_v51, %v902_v49  ;;  %v905_v53 = vpop.f32.mrb[2].mxu1 }
 0x23b   : > { %v906_v54 = vpop.f32.mrb[3].mxu1 }
 0x23c   : > { %v596_v55 = vadd.f32 %v904_v52, %v857_v50 }
 0x23e   : > { %v601_v56 = vmax.f32 %v596_v55, 0.0 }
 0x240   : > { %v602_v57 = vpack.c.bf16 %v601_v56, %v601_v56 }
 0x242   : > { %934 = vmatmul.mubr.bf16.vlgmr.msra.gmra.mrb[4].mxu0 %v602_v57 }
 0x315   : > { %v708_v59 = vpop.f32.mrb[4].mxu0 }
 0x316   : > { %v709_v60 = vadd.f32 %v874_v58, %v708_v59  ;;  %v935_v61 = vpop.f32.mrb[5].mxu0 }
 0x317   : > { %v711_v62 = vpop.f32.mrb[6].mxu0 }
 0x318   : > { %714 = vmax.xlane.f32.xlu0 %v709_v60  ;;  %v936_v63 = vpop.f32.mrb[7].mxu0 }
 0x3a5   : > { %v715_v0 = vpop.xlane.xlu0 %714 }
 0x3a6   : > { %v716_v1 = vsub.f32 %v709_v60, %v715_v0 }
 0x3a8   : > { %v717_v2 = vmul.f32 1.442695, %v716_v1 }
 0x3aa   : > { %1044 = vpow2.f32 %v717_v2 }
 0x3b4   : > { %v1045_v3 = vpop.eup %1044 }
 0x3b5   : > { %721 = vmax.xlane.f32.xlu0 %v1045_v3 }
 0x442   : > { %v722_v5 = vpop.xlane.xlu0 %721 }
 0x443   : > { %vm723_vm2 = vcmp.eq.f32.partialorder %v1045_v3, %v722_v5 }
 0x444   : > { %v724_v6 = vsel %vm723_vm2, %v720_v4, 128 }
 0x445   : > { %v726_v7 = vshra.s32 %v724_v6, 16  ;;  %v725_v9 = vand.u32 65535, %v724_v6 }
 0x447   : > { %v728_v8 = vcvt.s32.f32 %v726_v7  ;;  %v727_v11 = vcvt.s32.f32 %v725_v9 }
 0x449   : > { %729 = vmin.xlane.f32.xlu1 %v728_v8 }
 0x4d6   : > { %v730_v10 = vpop.xlane.xlu1 %729 }
 0x4d7   : > { %vm731_vm3 = vcmp.eq.f32.partialorder %v728_v8, %v730_v10  ;;  %v736_v13 = vcvt.f32.s32 %v730_v10 }
 0x4d8   : > { %v732_v12 = vsel %vm731_vm3, %v727_v11, inf }
 0x4d9   : > { %733 = vmin.xlane.f32.xlu1 %v732_v12  ;;  %v737_v15 = vshll.u32 %v736_v13, 16 }
 0x566   : > { %v734_v14 = vpop.xlane.xlu1 %733 }
 0x567   : > { %v735_v16 = vcvt.f32.s32 %v734_v14 }
 0x569   : > { %v738_v17 = vadd.s32 %v737_v15, %v735_v16 }
 0x56b   : > { %vm739_vm5 = vcmp.eq.s32.totalorder %v720_v4, %v738_v17 }
 0x56c   : > { %v883_v18 = vsel %vm739_vm5, 1.0, %v1213_v24 }
 0x56d   : > { %743 = vst.msk [vmem:[%s337_s24] sm:$0xff] %vm742_vm4, %v883_v18 }
 0x56e PF: > { %p19_p1 = scmp.ge.s32.totalorder %s1348_s11, 4   ;;  %s1490_s24 = smov %s1194_s25 }
 0x56f   : > { %s1491_s25 = smov %s1198_s26  ;;  %s1492_s26 = smov %s1376_s10 }
 0x570   : > { %s1493_s27 = smov %s1348_s11  ;;  %21 = sbr.rel (!%p19_p1) target bundleno = 5 (0x5), region = 100 }
 0x577   :  { %763 = vsyncpa [#allocation3], 1 }
 0x578   :  { %765 = vsyncpa [#allocation3 + $0x1], 1 }
 0x579   :  { %766 = vsyncpa [#allocation5], 1 }
 0x57a   :  { %767 = vsyncpa [#allocation8], 1 }

</bundles_post_ra>
